<compile_context>
chip_gen: v5e
topology: v5e:2x2
jax: 0.10.0
libtpu: 0.0.40
codegen_flags: <defaults>
</compile_context>

<pallas_src>
import jax
import jax.numpy as jnp
from jax.experimental import pallas as pl
from jax.experimental.pallas import tpu as pltpu


# ----------------------------------------------------------------------------
# Hardware-aware knobs
# ----------------------------------------------------------------------------
def _device_kind():
    try:
        return jax.devices()[0].device_kind.lower()
    except Exception:
        return ""


def _hw_config():
    """Generation-aware settings: VMEM limit, #TensorCores, epilogue dtype."""
    kind = _device_kind()
    is_v7 = "v7" in kind
    # bf16 VALU exists on v6e/v7x; v5e (and older) keep the fused f32 epilogue.
    bf16_epilogue = ("v6" in kind) or is_v7
    num_cores = 2 if is_v7 else 1

    vmem_cap = None
    try:
        vmem_cap = int(getattr(pltpu.get_tpu_info(), "vmem_capacity_bytes", 0)) or None
    except Exception:
        vmem_cap = None
    if vmem_cap is None:
        vmem_cap = (64 if is_v7 else 128) * 1024 * 1024

    # ~15% headroom for Mosaic internal scratch; hard cap 112 MiB, and keep
    # v7x safely under its 64 MiB-per-TC physical VMEM.
    vmem_limit = min(int(vmem_cap * 0.85), 112 * 1024 * 1024)
    if is_v7:
        vmem_limit = min(vmem_limit, 56 * 1024 * 1024)

    return {"bf16_epilogue": bf16_epilogue,
            "num_cores": num_cores,
            "vmem_limit": vmem_limit}


# ----------------------------------------------------------------------------
# Kernel: one batch tile through the whole (BN-folded) MLP.
# ----------------------------------------------------------------------------
def _make_kernel(bf16_epilogue):
    def kernel(x_ref, w1_ref, b1_ref, w2_ref, b2_ref, w3_ref, b3_ref, o_ref):
        # bf16 on the MXU, f32 accumulation.  Dropout = identity (eval mode),
        # BatchNorm is folded into the weights/biases on the host.
        x = x_ref[...].astype(jnp.bfloat16)

        # fc1 (+ folded bn1) + relu
        h = jnp.dot(x, w1_ref[...], preferred_element_type=jnp.float32)
        if bf16_epilogue:                      # v6e/v7x: bf16 VALU epilogue
            h = jnp.maximum(h.astype(jnp.bfloat16) + b1_ref[...], 0.0)
        else:                                  # v5e: single fused f32 pass
            h = jnp.maximum(h + b1_ref[...], 0.0).astype(jnp.bfloat16)

        # fc2 (+ folded bn2) + relu
        h = jnp.dot(h, w2_ref[...], preferred_element_type=jnp.float32)
        if bf16_epilogue:
            h = jnp.maximum(h.astype(jnp.bfloat16) + b2_ref[...], 0.0)
        else:
            h = jnp.maximum(h + b2_ref[...], 0.0).astype(jnp.bfloat16)

        # fc3 (logits, lane-padded to a multiple of 128)
        out = jnp.dot(h, w3_ref[...], preferred_element_type=jnp.float32)
        o_ref[...] = (out + b3_ref[...]).astype(o_ref.dtype)

    return kernel


# ----------------------------------------------------------------------------
# Batch-tile policy (generation-aware)
# ----------------------------------------------------------------------------
def _round_up(n, m):
    return ((n + m - 1) // m) * m


def _align_tile(n):
    """>=16 rows (bf16 sublane packing); snap to 128/256 (MXU M) only when the
    extra row padding is small."""
    n16 = _round_up(max(n, 16), 16)
    for m in (256, 128):
        nm = _round_up(n16, m)
        if nm - n16 <= m // 4:
            return nm
    return n16


def _default_batch_tile(B, *, num_cores, max_tile=1024):
    if num_cores > 1 and B > 256:
        # v7x with a large batch: even tile count so both TensorCores stay busy.
        tile = _align_tile(pl.cdiv(B, 2))
    else:
        # Single TensorCore (v5e/v6e), or a batch too small to amortize the
        # ~0.35us per-grid-step overhead across cores: ONE tile.
        tile = _align_tile(B)
    return min(tile, max_tile)


# ----------------------------------------------------------------------------
# Wrapper
# ----------------------------------------------------------------------------
def classifier_net(x, params, *, batch_tile=None, out_dtype=jnp.float32, hw=None):
    """x: [B, input_dim] float32.  params: output of fold_and_pad_params()."""
    if hw is None:
        hw = _hw_config()

    B, D_in = x.shape
    Hp = params["w1"].shape[1]            # lane-padded hidden dim
    Cp = params["w3"].shape[1]            # lane-padded class dim
    C = params["num_classes"]             # true class count
    out_itemsize = jnp.dtype(out_dtype).itemsize

    # Epilogue dtype: bf16 on v6e/v7x (bf16 VALU), f32 on v5e.
    ep_dtype = jnp.bfloat16 if hw["bf16_epilogue"] else jnp.float32
    w1, w2, w3 = params["w1"], params["w2"], params["w3"]
    b1 = params["b1"].astype(ep_dtype)
    b2 = params["b2"].astype(ep_dtype)
    b3 = params["b3"]
    operands = (w1, b1, w2, b2, w3, b3)
    param_bytes = sum(int(a.size) * a.dtype.itemsize for a in operands)

    if batch_tile is None:
        batch_tile = _default_batch_tile(B, num_cores=hw["num_cores"])
    assert batch_tile % 8 == 0, "batch_tile must be a multiple of 8 sublanes"

    # Rough resident-VMEM budget: whole weights stay resident; x/out tiles are
    # double-buffered; h has an f32 accumulator plus a bf16 copy live.
    per_row_bytes = (2 * D_in * 4 + 2 * Cp * out_itemsize + Hp * (4 + 2) * 2)
    budget = int(0.75 * hw["vmem_limit"])
    while batch_tile > 16 and param_bytes + batch_tile * per_row_bytes > budget:
        batch_tile = max(16, _round_up(batch_tile // 2, 16))
    # TODO(synk): if param_bytes alone exceeds the budget (very large hidden_dim
    # on v7x's 64 MiB VMEM), add a hidden-dim-tiled path (grid axis over Hp
    # blocks with a pl.when-guarded accumulator) instead of whole-weight residency.

    # Pad ragged batches up to a multiple of the tile (junk rows sliced below).
    Bp = _round_up(B, batch_tile)
    if Bp != B:
        x = jnp.pad(x, ((0, Bp - B), (0, 0)))
    grid = (Bp // batch_tile,)

    def rep_spec(shape):
        # Whole (small) parameter array, identical block every grid step:
        # single-buffer it to halve its resident VMEM.
        return pl.BlockSpec(shape, lambda i: (0, 0),
                            pipeline_mode=pl.Buffered(buffer_count=1))

    in_specs = [
        pl.BlockSpec((batch_tile, D_in), lambda i: (i, 0)),   # x tile
        rep_spec(w1.shape), rep_spec(b1.shape),
        rep_spec(w2.shape), rep_spec(b2.shape),
        rep_spec(w3.shape), rep_spec(b3.shape),
    ]
    out_specs = pl.BlockSpec((batch_tile, Cp), lambda i: (i, 0))

    flops = 2 * Bp * (D_in * Hp + Hp * Hp + Hp * Cp)
    bytes_accessed = Bp * D_in * 4 + Bp * Cp * out_itemsize + param_bytes

    out = pl.pallas_call(
        _make_kernel(hw["bf16_epilogue"]),
        out_shape=jax.ShapeDtypeStruct((Bp, Cp), out_dtype),
        grid_spec=pltpu.PrefetchScalarGridSpec(
            num_scalar_prefetch=0,
            grid=grid,
            in_specs=in_specs,
            out_specs=out_specs,
        ),
        compiler_params=pltpu.CompilerParams(
            dimension_semantics=("parallel",),        # batch tiles independent
            vmem_limit_bytes=hw["vmem_limit"],
        ),
        cost_estimate=pl.CostEstimate(flops=flops, transcendentals=0,
                                      bytes_accessed=bytes_accessed),
    )(x, w1, b1, w2, b2, w3, b3)

    # Slice away batch padding and the zero-weight padded logit columns BEFORE
    # any softmax/argmax downstream.
    return out[:B, :C]


# ----------------------------------------------------------------------------
# Parameters: PyTorch-style init, then host-side BN folding + lane padding.
# ----------------------------------------------------------------------------
def init_torch_params(key, input_dim, hidden_dim, num_classes):
    """Raw parameters with PyTorch layouts/initialization (eval-mode BN)."""
    ks = jax.random.split(key, 6)

    def linear(kw, kb, fan_in, fan_out):
        bound = 1.0 / jnp.sqrt(fan_in)
        w = jax.random.uniform(kw, (fan_out, fan_in), jnp.float32, -bound, bound)
        b = jax.random.uniform(kb, (fan_out,), jnp.float32, -bound, bound)
        return w, b

    fc1_w, fc1_b = linear(ks[0], ks[1], input_dim, hidden_dim)
    fc2_w, fc2_b = linear(ks[2], ks[3], hidden_dim, hidden_dim)
    fc3_w, fc3_b = linear(ks[4], ks[5], hidden_dim, num_classes)

    bn = lambda n: dict(gamma=jnp.ones((n,), jnp.float32),
                        beta=jnp.zeros((n,), jnp.float32),
                        mean=jnp.zeros((n,), jnp.float32),
                        var=jnp.ones((n,), jnp.float32))
    return {
        "fc1_w": fc1_w, "fc1_b": fc1_b, "bn1": bn(hidden_dim),
        "fc2_w": fc2_w, "fc2_b": fc2_b, "bn2": bn(hidden_dim),
        "fc3_w": fc3_w, "fc3_b": fc3_b,
        "bn_eps": 1e-5,
        "num_classes": num_classes,
    }


def fold_and_pad_params(raw, *, lane=128):
    """Fold BN into the Linears, transpose to [in,out], pad feature dims to a
    multiple of 128 lanes, cast weights to bf16 (biases stay f32 here; the
    wrapper casts b1/b2 to the generation's epilogue dtype)."""
    eps = raw["bn_eps"]

    def fold(w, b, bn):
        scale = bn["gamma"] / jnp.sqrt(bn["var"] + eps)          # [out]
        shift = bn["beta"] - bn["mean"] * scale                  # [out]
        return w.T * scale[None, :], b * scale + shift           # [in,out], [out]

    w1, b1 = fold(raw["fc1_w"], raw["fc1_b"], raw["bn1"])
    w2, b2 = fold(raw["fc2_w"], raw["fc2_b"], raw["bn2"])
    w3, b3 = raw["fc3_w"].T, raw["fc3_b"]

    D, H = w1.shape
    C = w3.shape[1]
    Hp, Cp = _round_up(H, lane), _round_up(C, lane)

    pad2 = lambda a, r, c: jnp.pad(a, ((0, r - a.shape[0]), (0, c - a.shape[1])))
    pad1 = lambda a, c: jnp.pad(a, (0, c - a.shape[0])).reshape(1, c)

    return {
        "w1": pad2(w1, D, Hp).astype(jnp.bfloat16),
        "b1": pad1(b1, Hp).astype(jnp.float32),
        "w2": pad2(w2, Hp, Hp).astype(jnp.bfloat16),
        "b2": pad1(b2, Hp).astype(jnp.float32),
        "w3": pad2(w3, Hp, Cp).astype(jnp.bfloat16),
        "b3": pad1(b3, Cp).astype(jnp.float32),
        "num_classes": C,
    }


# ----------------------------------------------------------------------------
# References
# ----------------------------------------------------------------------------
def torch_eval_reference(x, raw):
    """Pure-JAX f32 reference with PyTorch eval-mode semantics."""
    eps = raw["bn_eps"]

    def bn(h, p):
        return (h - p["mean"]) / jnp.sqrt(p["var"] + eps) * p["gamma"] + p["beta"]

    h = x @ raw["fc1_w"].T + raw["fc1_b"]
    h = jnp.maximum(bn(h, raw["bn1"]), 0.0)            # dropout = identity (eval)
    h = h @ raw["fc2_w"].T + raw["fc2_b"]
    h = jnp.maximum(bn(h, raw["bn2"]), 0.0)
    return h @ raw["fc3_w"].T + raw["fc3_b"]


def kernel_path_reference(x, p, *, bf16_epilogue):
    """Same folded/padded bf16 math as the kernel, in plain jnp."""
    def epilogue(h, b):
        if bf16_epilogue:
            return jnp.maximum(h.astype(jnp.bfloat16) + b.astype(jnp.bfloat16), 0.0)
        return jnp.maximum(h + b, 0.0).astype(jnp.bfloat16)

    h = jnp.dot(x.astype(jnp.bfloat16), p["w1"], preferred_element_type=jnp.float32)
    h = epilogue(h, p["b1"])
    h = jnp.dot(h, p["w2"], preferred_element_type=jnp.float32)
    h = epilogue(h, p["b2"])
    out = jnp.dot(h, p["w3"], preferred_element_type=jnp.float32) + p["b3"]
    return out[:, :p["num_classes"]]


# ----------------------------------------------------------------------------
# Demo + checks
# ----------------------------------------------------------------------------
if __name__ == "__main__":
    key = jax.random.PRNGKey(0)
    batch, input_dim, hidden_dim, num_classes = 16, 32, 32, 10

    kx, kp = jax.random.split(key)
    x = jax.random.normal(kx, (batch, input_dim), jnp.float32)

    raw = init_torch_params(kp, input_dim, hidden_dim, num_classes)
    params = fold_and_pad_params(raw)
    hw = _hw_config()

    out = jax.block_until_ready(classifier_net(x, params, hw=hw))
    assert out.shape == (batch, num_classes)
    assert out.dtype == jnp.float32

    # Tight check against the same folded/padded bf16 math as the kernel.
    ref_path = kernel_path_reference(x, params, bf16_epilogue=hw["bf16_epilogue"])
    assert jnp.allclose(out, ref_path, atol=2e-2, rtol=2e-2)

    # Loose check against exact f32 PyTorch eval-mode semantics
    # (bf16 weights introduce a small, bounded error).
    ref_f32 = torch_eval_reference(x, raw)
    assert jnp.allclose(out, ref_f32, atol=6e-2, rtol=6e-2)

    # bf16-logits variant (for argmax/top-k consumers): halves output HBM traffic.
    out_bf16 = jax.block_until_ready(
        classifier_net(x, params, hw=hw, out_dtype=jnp.bfloat16))
    assert out_bf16.dtype == jnp.bfloat16
    assert jnp.allclose(out_bf16.astype(jnp.float32), out, atol=6e-2, rtol=6e-2)

    print("KERNEL_OK")
</pallas_src>

<mosaic_0001>
module attributes {stable_mosaic.version = 11 : i64} {
  func.func @kernel(%arg0: i32, %arg1: memref<16x32xf32, #tpu.memory_space<vmem>>, %arg2: memref<32x128xbf16, #tpu.memory_space<vmem>>, %arg3: memref<1x128xf32, #tpu.memory_space<vmem>>, %arg4: memref<128x128xbf16, #tpu.memory_space<vmem>>, %arg5: memref<1x128xf32, #tpu.memory_space<vmem>>, %arg6: memref<128x128xbf16, #tpu.memory_space<vmem>>, %arg7: memref<1x128xf32, #tpu.memory_space<vmem>>, %arg8: memref<16x128xf32, #tpu.memory_space<vmem>>) attributes {dimension_semantics = [#tpu.dimension_semantics<parallel>], iteration_bounds = array<i64: 1>, scalar_prefetch = 0 : i64, scratch_operands = 0 : i64, tpu.core_type = #tpu.core_type<tc>, window_params = [{transform_indices = @transform_0, window_bounds = array<i64: 16, 32>}, {pipeline_mode = #tpu.pipeline_mode<synchronous>, transform_indices = @transform_1, window_bounds = array<i64: 32, 128>}, {pipeline_mode = #tpu.pipeline_mode<synchronous>, transform_indices = @transform_2, window_bounds = array<i64: 1, 128>}, {pipeline_mode = #tpu.pipeline_mode<synchronous>, transform_indices = @transform_3, window_bounds = array<i64: 128, 128>}, {pipeline_mode = #tpu.pipeline_mode<synchronous>, transform_indices = @transform_4, window_bounds = array<i64: 1, 128>}, {pipeline_mode = #tpu.pipeline_mode<synchronous>, transform_indices = @transform_5, window_bounds = array<i64: 128, 128>}, {pipeline_mode = #tpu.pipeline_mode<synchronous>, transform_indices = @transform_6, window_bounds = array<i64: 1, 128>}, {transform_indices = @transform_7, window_bounds = array<i64: 16, 128>}]} {
    %c0 = arith.constant 0 : index
    %c0_0 = arith.constant 0 : index
    %0 = vector.load %arg1[%c0, %c0_0] : memref<16x32xf32, #tpu.memory_space<vmem>>, vector<16x32xf32>
    %1 = arith.truncf %0 : vector<16x32xf32> to vector<16x32xbf16>
    %c0_1 = arith.constant 0 : index
    %c0_2 = arith.constant 0 : index
    %2 = vector.load %arg2[%c0_1, %c0_2] : memref<32x128xbf16, #tpu.memory_space<vmem>>, vector<32x128xbf16>
    %cst = arith.constant dense<0.000000e+00> : vector<16x128xf32>
    %3 = tpu.matmul %1, %2, %cst {dimension_numbers = #tpu.dot_dimension_numbers<[1], [0], [0], [1], [0, 0, 1, 1], [], []>} : vector<16x32xbf16>, vector<32x128xbf16>, vector<16x128xf32> -> vector<16x128xf32>
    %c0_3 = arith.constant 0 : index
    %c0_4 = arith.constant 0 : index
    %4 = vector.load %arg3[%c0_3, %c0_4] : memref<1x128xf32, #tpu.memory_space<vmem>>, vector<1x128xf32>
    %5 = vector.broadcast %4 : vector<1x128xf32> to vector<16x128xf32>
    %6 = arith.addf %3, %5 : vector<16x128xf32>
    %cst_5 = arith.constant 0.000000e+00 : f32
    %7 = vector.broadcast %cst_5 : f32 to vector<16x128xf32>
    %8 = arith.maximumf %6, %7 : vector<16x128xf32>
    %9 = arith.truncf %8 : vector<16x128xf32> to vector<16x128xbf16>
    %c0_6 = arith.constant 0 : index
    %c0_7 = arith.constant 0 : index
    %10 = vector.load %arg4[%c0_6, %c0_7] : memref<128x128xbf16, #tpu.memory_space<vmem>>, vector<128x128xbf16>
    %cst_8 = arith.constant dense<0.000000e+00> : vector<16x128xf32>
    %11 = tpu.matmul %9, %10, %cst_8 {dimension_numbers = #tpu.dot_dimension_numbers<[1], [0], [0], [1], [0, 0, 1, 1], [], []>} : vector<16x128xbf16>, vector<128x128xbf16>, vector<16x128xf32> -> vector<16x128xf32>
    %c0_9 = arith.constant 0 : index
    %c0_10 = arith.constant 0 : index
    %12 = vector.load %arg5[%c0_9, %c0_10] : memref<1x128xf32, #tpu.memory_space<vmem>>, vector<1x128xf32>
    %13 = vector.broadcast %12 : vector<1x128xf32> to vector<16x128xf32>
    %14 = arith.addf %11, %13 : vector<16x128xf32>
    %cst_11 = arith.constant 0.000000e+00 : f32
    %15 = vector.broadcast %cst_11 : f32 to vector<16x128xf32>
    %16 = arith.maximumf %14, %15 : vector<16x128xf32>
    %17 = arith.truncf %16 : vector<16x128xf32> to vector<16x128xbf16>
    %c0_12 = arith.constant 0 : index
    %c0_13 = arith.constant 0 : index
    %18 = vector.load %arg6[%c0_12, %c0_13] : memref<128x128xbf16, #tpu.memory_space<vmem>>, vector<128x128xbf16>
    %cst_14 = arith.constant dense<0.000000e+00> : vector<16x128xf32>
    %19 = tpu.matmul %17, %18, %cst_14 {dimension_numbers = #tpu.dot_dimension_numbers<[1], [0], [0], [1], [0, 0, 1, 1], [], []>} : vector<16x128xbf16>, vector<128x128xbf16>, vector<16x128xf32> -> vector<16x128xf32>
    %c0_15 = arith.constant 0 : index
    %c0_16 = arith.constant 0 : index
    %20 = vector.load %arg7[%c0_15, %c0_16] : memref<1x128xf32, #tpu.memory_space<vmem>>, vector<1x128xf32>
    %21 = vector.broadcast %20 : vector<1x128xf32> to vector<16x128xf32>
    %22 = arith.addf %19, %21 : vector<16x128xf32>
    %c0_17 = arith.constant 0 : index
    %c0_18 = arith.constant 0 : index
    %23 = vector.load %arg8[%c0_17, %c0_18] : memref<16x128xf32, #tpu.memory_space<vmem>>, vector<16x128xf32>
    tpu.vector_store %arg8[%c0_17, %c0_18], %22 {strides = array<i32>} : memref<16x128xf32, #tpu.memory_space<vmem>>, vector<16x128xf32>,
    return
  }
  func.func @transform_0(%arg0: i32) -> (i32, i32) {
    %c0_i32 = arith.constant 0 : i32
    %c0_i32_0 = arith.constant 0 : i32
    return %arg0, %c0_i32 : i32, i32
  }
  func.func @transform_1(%arg0: i32) -> (i32, i32) {
    %c0_i32 = arith.constant 0 : i32
    %c0_i32_0 = arith.constant 0 : i32
    %c0_i32_1 = arith.constant 0 : i32
    return %c0_i32, %c0_i32_0 : i32, i32
  }
  func.func @transform_2(%arg0: i32) -> (i32, i32) {
    %c0_i32 = arith.constant 0 : i32
    %c0_i32_0 = arith.constant 0 : i32
    %c0_i32_1 = arith.constant 0 : i32
    return %c0_i32, %c0_i32_0 : i32, i32
  }
  func.func @transform_3(%arg0: i32) -> (i32, i32) {
    %c0_i32 = arith.constant 0 : i32
    %c0_i32_0 = arith.constant 0 : i32
    %c0_i32_1 = arith.constant 0 : i32
    return %c0_i32, %c0_i32_0 : i32, i32
  }
  func.func @transform_4(%arg0: i32) -> (i32, i32) {
    %c0_i32 = arith.constant 0 : i32
    %c0_i32_0 = arith.constant 0 : i32
    %c0_i32_1 = arith.constant 0 : i32
    return %c0_i32, %c0_i32_0 : i32, i32
  }
  func.func @transform_5(%arg0: i32) -> (i32, i32) {
    %c0_i32 = arith.constant 0 : i32
    %c0_i32_0 = arith.constant 0 : i32
    %c0_i32_1 = arith.constant 0 : i32
    return %c0_i32, %c0_i32_0 : i32, i32
  }
  func.func @transform_6(%arg0: i32) -> (i32, i32) {
    %c0_i32 = arith.constant 0 : i32
    %c0_i32_0 = arith.constant 0 : i32
    %c0_i32_1 = arith.constant 0 : i32
    return %c0_i32, %c0_i32_0 : i32, i32
  }
  func.func @transform_7(%arg0: i32) -> (i32, i32) {
    %c0_i32 = arith.constant 0 : i32
    %c0_i32_0 = arith.constant 0 : i32
    return %arg0, %c0_i32 : i32, i32
  }
}

</mosaic_0001>

<bundles_post_ra>
// kernel: tpu_custom_call.1
= control target key start
LH: loop header
LB: loop body
LE: loop exit
PB: predicated region body
PF: predicated region fallthrough
CT: control target
= control target key end

     0   :  { %12 = vsyncpa [#allocation3], 0  ;;  %s635_s0 = inlined_call_operand.hbm [shape: f32[16,32], index: 0, kind: input, shape index: {}]   ;;  %s636_s1 = inlined_call_operand.hbm [shape: bf16[32,128], index: 1, kind: input, shape index: {}]   ;;  %s637_s2 = inlined_call_operand.vmem [shape: f32[1,128], index: 2, kind: input, shape index: {}]   ;;  %s638_s3 = inlined_call_operand.hbm [shape: bf16[128,128], index: 3, kind: input, shape index: {}]   ;;  %s639_s4 = inlined_call_operand.vmem [shape: f32[1,128], index: 4, kind: input, shape index: {}]   ;;  %s640_s5 = inlined_call_operand.hbm [shape: bf16[128,128], index: 5, kind: input, shape index: {}]   ;;  %s641_s6 = inlined_call_operand.vmem [shape: f32[1,128], index: 6, kind: input, shape index: {}]   ;;  %s642_s7 = inlined_call_operand.hbm [shape: f32[16,128], index: 7, kind: output, shape index: {}]  }
   0x1   :  { %13 = vsyncpa [#allocation6], 0 }
   0x2   :  { %14 = vsyncpa [#allocation9], 0  ;;  %s33_s26 = sshll.u32 %s636_s1, 4  ;;  %s34_s26 = int_to_ptr.hbm [resolvable:$true] %s33_s26 }
   0x3   :  { %15 = vsyncpa [#allocation4], 0  ;;  %s556_s27 = smov [#allocation5]   ;;  %s20_s8 = sshll.u32 %s635_s0, 4  ;;  %s21_s8 = int_to_ptr.hbm [resolvable:$true] %s20_s8 }
   0x4   :  { %s35_s28 = sshll.u32 %s556_s27, 4  ;;  %s557_s9 = smov 64   ;;  %s36_s28 = int_to_ptr.vmem [resolvable:$true] %s35_s28 }
   0x5   :  { %s558_s10 = smov 4   ;;  %s559_s11 = smov [#allocation2]  }
   0x6   :  { %41 = dma.hbm_to_vmem [thread:$0]  %s34_s26, 256, %s36_s28, [#allocation6], %s557_s9, %s557_s9, %s558_s10  }
   0x7   :  { %s22_s12 = sshll.u32 %s559_s11, 4  ;;  %s560_s13 = smov 128   ;;  %s23_s12 = int_to_ptr.vmem [resolvable:$true] %s22_s12 }
   0x8   :  { %s561_s14 = smov 8   ;;  %s48_s16 = sshll.u32 %s638_s3, 4  ;;  %s49_s16 = int_to_ptr.hbm [resolvable:$true] %s48_s16 }
   0x9   :  { %28 = dma.hbm_to_vmem [thread:$0]  %s21_s8, 256, %s23_s12, [#allocation3], %s560_s13, %s560_s13, %s561_s14  }
   0xa   :  { %s562_s17 = smov [#allocation7]   ;;  %s63_s20 = sshll.u32 %s640_s5, 4  ;;  %s64_s20 = int_to_ptr.hbm [resolvable:$true] %s63_s20 }
   0xb   :  { %s50_s0 = sshll.u32 %s562_s17, 4  ;;  %s563_s21 = smov [#allocation8]   ;;  %s51_s0 = int_to_ptr.vmem [resolvable:$true] %s50_s0 }
   0xc   :  { %56 = dma.hbm_to_vmem [thread:$0]  %s49_s16, 1024, %s51_s0, [#allocation6], %s557_s9, %s557_s9, %s558_s10  }
   0xd   :  { %s65_s22 = sshll.u32 %s563_s21, 4  ;;  %s66_s22 = int_to_ptr.vmem [resolvable:$true] %s65_s22 }
   0xe   :  { %71 = dma.hbm_to_vmem [thread:$0]  %s64_s20, 1024, %s66_s22, [#allocation9], %s557_s9, %s557_s9, %s558_s10  }
   0xf   :  { %548 = dma.done.wait [#allocation3], 256  }
  0x10   :  { %549 = vsyncadd [#allocation3], 4294967040 }
  0x11   :  { %550 = dma.done.wait [#allocation6], 1280  }
  0x12   :  { %551 = vsyncadd [#allocation6], 4294966016 }
  0x13   :  { %552 = dma.done.wait [#allocation9], 1024  }
  0x14   :  { %553 = vsyncadd [#allocation9], 4294966272  ;;  %v399_v0 = vld [vmem:[#allocation5 + $0x8] sm:$0xff]  ;;  %v398_v1 = vld [vmem:[#allocation5] sm:$0xff]  ;;  %vm114_vm0 = vcmask 261120   ;;  %s564_s26 = smov [#allocation10]  }
  0x15   :  { %v407_v2 = vld [vmem:[#allocation7 + $0x38] sm:$0xff]  ;;  %124 = vmatpush.bf16.msra.mxu0 %v399_v0  ;;  %v91_v3 = vld [vmem:[#allocation2] sm:$0xff]  ;;  %v92_v4 = vld [vmem:[#allocation2 + $0x8] sm:$0xff]  ;;  %s308_s27 = sshll.u32 %s564_s26, 4  ;;  %s309_s27 = int_to_ptr.vmem [resolvable:$true] %s308_s27 }
  0x16   :  { %203 = vmatpush.bf16.msra.mxu1 %v407_v2  ;;  %v406_v5 = vld [vmem:[#allocation7 + $0x30] sm:$0xff]  ;;  %v93_v6 = vpack.c.bf16 %v92_v4, %v91_v3  ;;  %v405_v7 = vld [vmem:[#allocation7 + $0x28] sm:$0xff]  ;;  %v404_v8 = vld [vmem:[#allocation7 + $0x20] sm:$0xff] }
  0x17   :  { %v403_v9 = vld [vmem:[#allocation7 + $0x18] sm:$0xff]  ;;  %v402_v10 = vld [vmem:[#allocation7 + $0x10] sm:$0xff]  ;;  %v401_v11 = vld [vmem:[#allocation7 + $0x8] sm:$0xff] }
  0x18   :  { %v400_v12 = vld [vmem:[#allocation7] sm:$0xff]  ;;  %v415_v13 = vld [vmem:[#allocation8 + $0x38] sm:$0xff]  ;;  %v414_v14 = vld [vmem:[#allocation8 + $0x30] sm:$0xff] }
  0x19   :  { %125 = vmatpush.bf16.msra.mxu0 %v398_v1  ;;  %288 = vmatpush.bf16.msra.mxu2 %v415_v13  ;;  %v413_v15 = vld [vmem:[#allocation8 + $0x28] sm:$0xff]  ;;  %v412_v16 = vld [vmem:[#allocation8 + $0x20] sm:$0xff]  ;;  %v411_v25 = vld [vmem:[#allocation8 + $0x18] sm:$0xff] }
  0x1a   :  { %204 = vmatpush.bf16.msra.mxu1 %v406_v5  ;;  %v425_v18 = vld [vmem:[%s637_s2] ss:$0 sm:$0xff]  ;;  %v410_v26 = vld [vmem:[#allocation8 + $0x10] sm:$0xff]  ;;  %v409_v27 = vld [vmem:[#allocation8 + $0x8] sm:$0xff] }
  0x1b   :  { %v408_v28 = vld [vmem:[#allocation8] sm:$0xff] }
  0x1c   :  { %333 = vmatmul.msk.bf16.vlgmr.msra.gmra.mxu0 %vm114_vm0, %v93_v6  ;;  %v426_v30 = vld [vmem:[%s639_s4] ss:$0 sm:$0xff]  ;;  %s310_s4 = sshll.u32 %s642_s7, 4  ;;  %s311_s4 = int_to_ptr.hbm [resolvable:$true] %s310_s4 }
  0x1d   :  { %289 = vmatpush.bf16.msra.mxu2 %v414_v14  ;;  %v427_v37 = vld [vmem:[%s641_s6] ss:$0 sm:$0xff] }
  0x1e   :  { %205 = vmatpush.bf16.msra.mxu1 %v405_v7 }
  0x21   :  { %290 = vmatpush.bf16.msra.mxu2 %v413_v15 }
  0x22   :  { %206 = vmatpush.bf16.msra.mxu1 %v404_v8 }
  0x25   :  { %291 = vmatpush.bf16.msra.mxu2 %v412_v16 }
  0x26   :  { %207 = vmatpush.bf16.msra.mxu1 %v403_v9 }
  0x29   :  { %292 = vmatpush.bf16.msra.mxu2 %v411_v25 }
  0x2a   :  { %208 = vmatpush.bf16.msra.mxu1 %v402_v10 }
  0x2d   :  { %293 = vmatpush.bf16.msra.mxu2 %v410_v26 }
  0x2e   :  { %209 = vmatpush.bf16.msra.mxu1 %v401_v11 }
  0x31   :  { %294 = vmatpush.bf16.msra.mxu2 %v409_v27 }
  0x32   :  { %210 = vmatpush.bf16.msra.mxu1 %v400_v12 }
  0x35   :  { %295 = vmatpush.bf16.msra.mxu2 %v408_v28 }
  0x99   :  { %v127_v17 = vpop.f32.mrf.mxu0 }
  0x9a   :  { %v128_v19 = vadd.f32 %v425_v18, %v127_v17 }
  0x9c   :  { %v132_v22 = vmax.f32 %v128_v19, 0.0 }
  0xa1   :  { %v129_v20 = vpop.f32.mrf.mxu0 }
  0xa2   :  { %v130_v21 = vadd.f32 %v425_v18, %v129_v20 }
  0xa4   :  { %v133_v23 = vmax.f32 %v130_v21, 0.0 }
  0xa6   :  { %v134_v24 = vpack.c.bf16 %v133_v23, %v132_v22 }
  0xa8   :  { %211 = vmatmul.bf16.vlgmr.msra.gmra.mxu1 %v134_v24 }
 0x125   :  { %v212_v29 = vpop.f32.mrf.mxu1 }
 0x126   :  { %v213_v31 = vadd.f32 %v426_v30, %v212_v29 }
 0x128   :  { %v217_v34 = vmax.f32 %v213_v31, 0.0 }
 0x12d   :  { %v214_v32 = vpop.f32.mrf.mxu1 }
 0x12e   :  { %v215_v33 = vadd.f32 %v426_v30, %v214_v32 }
 0x130   :  { %v218_v35 = vmax.f32 %v215_v33, 0.0 }
 0x132   :  { %v219_v36 = vpack.c.bf16 %v218_v35, %v217_v34 }
 0x134   :  { %296 = vmatmul.bf16.vlgmr.msra.gmra.mxu2 %v219_v36 }
 0x1b7   :  { %v297_v38 = vpop.f32.mrf.mxu2 }
 0x1b8   :  { %v298_v39 = vadd.f32 %v427_v37, %v297_v38 }
 0x1ba   :  { %302 = vst [vmem:[#allocation10] sm:$0xff] %v298_v39 }
 0x1bf   :  { %v299_v40 = vpop.f32.mrf.mxu2 }
 0x1c0   :  { %v300_v41 = vadd.f32 %v427_v37, %v299_v40 }
 0x1c2   :  { %303 = vst [vmem:[#allocation10 + $0x8] sm:$0xff] %v300_v41 }
 0x1c3   :  { %316 = dma.vmem_to_hbm [thread:$0]  %s309_s27, 256, %s311_s4, [#allocation4], %s560_s13, %s560_s13, %s561_s14  }
 0x1c4   :  { %554 = dma.done.wait [#allocation4], 256  }
 0x1c5   :  { %555 = vsyncadd [#allocation4], 4294967040 }
 0x1c6   :  { %321 = vsyncpa [#allocation3], 1 }
 0x1c7   :  { %322 = vsyncpa [#allocation6], 1 }
 0x1c8   :  { %323 = vsyncpa [#allocation9], 1 }
 0x1c9   :  { %324 = vsyncpa [#allocation4], 1 }

</bundles_post_ra>
